<compile_context>
chip_gen: v7x
topology: tpu7x:2x2x1
jax: 0.10.0
libtpu: 0.0.40
codegen_flags: <defaults>
</compile_context>

<pallas_src>
import functools

import jax
import jax.numpy as jnp
from jax import lax
from jax.experimental import pallas as pl
from jax.experimental.pallas import tpu as pltpu


def _attention_kernel(x_ref, w_qkv_ref, b_qkv_ref, w_dw_ref, b_dw_ref,
                      dwm_ref, temp_ref, hmask_ref, w_out_ref, b_out_ref,
                      o_ref, *, H, W, fast):
    # x_ref:     (1, C, HW)   lane-dense activations (HW on lanes)
    # w_qkv_ref: (3C, C)      1x1 qkv conv weight (f32 or bf16)
    # b_qkv_ref: (3C, 1)
    # w_dw_ref:  (9, 3C, 1)   depthwise taps, tap t = ky*3 + kx (f32)
    # b_dw_ref:  (3C, 1)
    # dwm_ref:   (9, 1, HW)   per-tap boundary masks (1 inside image, 0 = pad)
    # temp_ref:  (C, 1)       per-row temperature (temperature[c // ch])
    # hmask_ref: (C, C)       additive head-block mask (0 on-block, -1e30 off)
    # w_out_ref: (C, C)       1x1 project_out weight (f32 or bf16)
    # b_out_ref: (C, 1)
    # o_ref:     (1, C, HW)
    C = x_ref.shape[1]
    C3 = w_qkv_ref.shape[0]
    HW = H * W

    x = x_ref[0]                                                  # (C, HW) f32

    # ---- 1x1 qkv conv == per-pixel MXU matmul (operand dtype = weight dtype,
    #      f32 accumulation) ---------------------------------------------------
    qkv = jnp.dot(w_qkv_ref[...], x.astype(w_qkv_ref.dtype),
                  preferred_element_type=jnp.float32)
    qkv = qkv + b_qkv_ref[...]                                    # (3C, HW) f32

    # ---- depthwise 3x3 conv (pad=1) in lane-dense (3C, HW) layout -----------
    # tap (ky,kx): source offset s = (ky-1)*W + (kx-1) on the flattened spatial
    # axis; pltpu.roll brings the neighbour into place (XLU), the per-tap mask
    # zeroes lanes whose source pixel falls in the zero padding.
    acc = jnp.zeros((C3, HW), jnp.float32)
    for t in range(9):
        dy, dx = t // 3 - 1, t % 3 - 1
        s = dy * W + dx
        shifted = qkv if s == 0 else pltpu.roll(qkv, shift=(-s) % HW, axis=1)
        contrib = shifted * w_dw_ref[t]                           # per-chan tap
        if not (dy == 0 and dx == 0):
            contrib = contrib * dwm_ref[t]                        # boundary mask
        acc = acc + contrib
    dw = acc + b_dw_ref[...]                                      # (3C, HW)

    q = dw[0 * C:1 * C]                                           # (C, HW)
    k = dw[1 * C:2 * C]
    v = dw[2 * C:3 * C]

    # ---- L2 normalize whole (C, HW) slabs over the lane axis (EUP rsqrt) ----
    def _l2n(t):
        ss = jnp.sum(t * t, axis=-1, keepdims=True)               # (C, 1)
        return t * lax.rsqrt(ss + 1e-24)

    qn = _l2n(q)
    kn = _l2n(k)

    # ---- fused per-head QK^T: one (C,HW)x(HW,C) MXU gram; heads separated by
    #      the additive block mask (off-block -> -1e30 -> exp = 0), which makes
    #      the full-row softmax exactly the per-head softmax ------------------
    gram = lax.dot_general(qn, kn, (((1,), (1,)), ((), ())),
                           preferred_element_type=jnp.float32)    # (C, C)
    logits = gram * temp_ref[...] + hmask_ref[...]
    logits = logits - jnp.max(logits, axis=-1, keepdims=True)
    p = jnp.exp(logits)
    denom = jnp.sum(p, axis=-1, keepdims=True)
    if fast:
        p = p * pl.reciprocal(denom, approx=True)                 # EUP
    else:
        p = p / denom

    # block-diagonal attention applied in one MXU matmul (== per-head attn @ v)
    out = jnp.dot(p, v, preferred_element_type=jnp.float32)       # (C, HW)

    # ---- 1x1 project_out: MXU matmul, lane-dense unmasked store -------------
    y = jnp.dot(w_out_ref[...], out.astype(w_out_ref.dtype),
                preferred_element_type=jnp.float32)
    y = y + b_out_ref[...]
    o_ref[0] = y.astype(o_ref.dtype)


@functools.partial(jax.jit, static_argnames=("num_heads", "fast_math"))
def attention_pallas(x_nchw, w_qkv, b_qkv, w_dw, b_dw, temperature,
                     w_out, b_out, *, num_heads, fast_math=True):
    """x_nchw: (N, C, H, W).  Torch-layout params:
       w_qkv (3C, C, 1, 1), b_qkv (3C,), w_dw (3C, 1, 3, 3), b_dw (3C,),
       temperature (num_heads, 1, 1), w_out (C, C, 1, 1), b_out (C,).
       fast_math=True: bf16 MXU operands for the 1x1 convs (f32 accumulate)
       and approx EUP reciprocal in the softmax."""
    N, C, H, W = x_nchw.shape
    C3 = w_qkv.shape[0]
    HW = H * W
    ch = C // num_heads
    matmul_dtype = jnp.bfloat16 if fast_math else jnp.float32

    # free reshape (no transpose, no extra HBM traffic): NCHW consumed directly
    x = x_nchw.reshape(N, C, HW).astype(jnp.float32)
    w_qkv_m = w_qkv[:, :, 0, 0].astype(matmul_dtype)              # (3C, C)
    b_qkv_m = b_qkv.reshape(C3, 1).astype(jnp.float32)
    # depthwise taps -> (9, 3C, 1) with tap index t = ky*3 + kx (f32: VPU math)
    w_dw_m = jnp.transpose(w_dw[:, 0], (1, 2, 0)).reshape(9, C3)[:, :, None]
    w_dw_m = w_dw_m.astype(jnp.float32)
    b_dw_m = b_dw.reshape(C3, 1).astype(jnp.float32)
    w_out_m = w_out[:, :, 0, 0].astype(matmul_dtype)              # (C, C)
    b_out_m = b_out.reshape(C, 1).astype(jnp.float32)

    # per-tap boundary masks for the roll-based depthwise conv: (9, 1, HW)
    row = jnp.repeat(jnp.arange(H), W)                            # (HW,)
    col = jnp.tile(jnp.arange(W), H)                              # (HW,)
    masks = []
    for t in range(9):
        dy, dx = t // 3 - 1, t % 3 - 1
        ok = ((row + dy >= 0) & (row + dy <= H - 1) &
              (col + dx >= 0) & (col + dx <= W - 1))
        masks.append(ok)
    dw_mask = jnp.stack(masks).astype(jnp.float32).reshape(9, 1, HW)

    # per-row temperature and additive head-block mask for the fused gram
    temp_rows = jnp.repeat(temperature.reshape(num_heads), ch)
    temp_rows = temp_rows.reshape(C, 1).astype(jnp.float32)
    head_id = jnp.arange(C) // ch
    head_mask = jnp.where(head_id[:, None] == head_id[None, :],
                          0.0, -1e30).astype(jnp.float32)

    kernel = functools.partial(_attention_kernel, H=H, W=W, fast=fast_math)

    # TODO(synk): for production Restormer shapes on v7x (64 MiB VMEM), add an
    # HW-tile grid axis (accumulate the gram / L2 sums across tiles, softmax
    # once, second tiled pass for attn@v + project_out) and set
    # vmem_limit_bytes explicitly.  Not needed at this block size.
    out = pl.pallas_call(
        kernel,
        out_shape=jax.ShapeDtypeStruct((N, C, HW), jnp.float32),
        grid_spec=pltpu.PrefetchScalarGridSpec(
            num_scalar_prefetch=0,
            grid=(N,),
            in_specs=[
                pl.BlockSpec((1, C, HW), lambda n: (n, 0, 0)),
                pl.BlockSpec((C3, C), lambda n: (0, 0)),
                pl.BlockSpec((C3, 1), lambda n: (0, 0)),
                pl.BlockSpec((9, C3, 1), lambda n: (0, 0, 0)),
                pl.BlockSpec((C3, 1), lambda n: (0, 0)),
                pl.BlockSpec((9, 1, HW), lambda n: (0, 0, 0)),
                pl.BlockSpec((C, 1), lambda n: (0, 0)),
                pl.BlockSpec((C, C), lambda n: (0, 0)),
                pl.BlockSpec((C, C), lambda n: (0, 0)),
                pl.BlockSpec((C, 1), lambda n: (0, 0)),
            ],
            out_specs=pl.BlockSpec((1, C, HW), lambda n: (n, 0, 0)),
        ),
        compiler_params=pltpu.CompilerParams(
            dimension_semantics=("parallel",)),
    )(x, w_qkv_m, b_qkv_m, w_dw_m, b_dw_m, dw_mask, temp_rows, head_mask,
      w_out_m, b_out_m)

    return out.reshape(N, C, H, W)                                # free reshape


def attention_reference(x, w_qkv, b_qkv, w_dw, b_dw, temperature,
                        w_out, b_out, num_heads):
    """Pure-JAX reference mirroring the PyTorch forward."""
    dn = ("NCHW", "OIHW", "NCHW")
    qkv = lax.conv_general_dilated(x, w_qkv, (1, 1), "VALID",
                                   dimension_numbers=dn)
    qkv = qkv + b_qkv[None, :, None, None]
    C3 = qkv.shape[1]
    qkv = lax.conv_general_dilated(qkv, w_dw, (1, 1), ((1, 1), (1, 1)),
                                   dimension_numbers=dn,
                                   feature_group_count=C3)
    qkv = qkv + b_dw[None, :, None, None]
    N, _, H, W = x.shape
    C = C3 // 3
    q, k, v = qkv[:, :C], qkv[:, C:2 * C], qkv[:, 2 * C:]

    def heads(t):
        return t.reshape(N, num_heads, C // num_heads, H * W)

    q, k, v = heads(q), heads(k), heads(v)

    def l2n(t):
        nrm = jnp.sqrt(jnp.sum(t * t, axis=-1, keepdims=True))
        return t / jnp.maximum(nrm, 1e-12)

    q, k = l2n(q), l2n(k)
    attn = jnp.einsum('bhcx,bhdx->bhcd', q, k) * temperature[None]
    attn = jax.nn.softmax(attn, axis=-1)
    out = jnp.einsum('bhcd,bhdx->bhcx', attn, v).reshape(N, C, H, W)
    out = lax.conv_general_dilated(out, w_out, (1, 1), "VALID",
                                   dimension_numbers=dn)
    return out + b_out[None, :, None, None]


if __name__ == "__main__":
    # Module config: dim=8, num_heads=2, bias=True; input (2, 8, 16, 16)
    N, C, H, W = 2, 8, 16, 16
    num_heads = 2
    C3 = 3 * C

    key = jax.random.PRNGKey(0)
    ks = jax.random.split(key, 9)
    x = jax.random.normal(ks[0], (N, C, H, W), jnp.float32)
    w_qkv = jax.random.normal(ks[1], (C3, C, 1, 1), jnp.float32) * 0.2
    b_qkv = jax.random.normal(ks[2], (C3,), jnp.float32) * 0.1
    w_dw = jax.random.normal(ks[3], (C3, 1, 3, 3), jnp.float32) * 0.2
    b_dw = jax.random.normal(ks[4], (C3,), jnp.float32) * 0.1
    temperature = 1.0 + 0.5 * jax.random.normal(ks[5], (num_heads, 1, 1),
                                                jnp.float32)
    w_out = jax.random.normal(ks[6], (C, C, 1, 1), jnp.float32) * 0.2
    b_out = jax.random.normal(ks[7], (C,), jnp.float32) * 0.1

    y_ref = attention_reference(x, w_qkv, b_qkv, w_dw, b_dw, temperature,
                                w_out, b_out, num_heads)

    # exact-math path (f32 MXU operands, exact reciprocal): verifies the
    # roll-based dwconv + fused-gram attention algorithm against the reference
    y_exact = attention_pallas(x, w_qkv, b_qkv, w_dw, b_dw, temperature,
                               w_out, b_out, num_heads=num_heads,
                               fast_math=False)
    y_exact = jax.block_until_ready(y_exact)
    assert y_exact.shape == (N, C, H, W), y_exact.shape
    assert jnp.allclose(y_exact, y_ref, atol=1e-3, rtol=1e-3), \
        float(jnp.max(jnp.abs(y_exact - y_ref)))

    # fast-math path (default): bf16 MXU operands for the 1x1 convs + approx
    # EUP reciprocal; looser tolerance reflects bf16 operand rounding.
    y_fast = attention_pallas(x, w_qkv, b_qkv, w_dw, b_dw, temperature,
                              w_out, b_out, num_heads=num_heads,
                              fast_math=True)
    y_fast = jax.block_until_ready(y_fast)
    assert y_fast.shape == (N, C, H, W), y_fast.shape
    assert jnp.allclose(y_fast, y_ref, atol=2e-2, rtol=2e-2), \
        float(jnp.max(jnp.abs(y_fast - y_ref)))

    print("KERNEL_OK")
</pallas_src>

<mosaic_0001>
module attributes {stable_mosaic.version = 11 : i64} {
  func.func @_attention_kernel(%arg0: i32, %arg1: memref<1x8x256xf32, #tpu.memory_space<vmem>>, %arg2: memref<24x8xf32, #tpu.memory_space<vmem>>, %arg3: memref<24x1xf32, #tpu.memory_space<vmem>>, %arg4: memref<9x24x1xf32, #tpu.memory_space<vmem>>, %arg5: memref<24x1xf32, #tpu.memory_space<vmem>>, %arg6: memref<9x1x256xf32, #tpu.memory_space<vmem>>, %arg7: memref<8x1xf32, #tpu.memory_space<vmem>>, %arg8: memref<8x8xf32, #tpu.memory_space<vmem>>, %arg9: memref<8x8xf32, #tpu.memory_space<vmem>>, %arg10: memref<8x1xf32, #tpu.memory_space<vmem>>, %arg11: memref<1x8x256xf32, #tpu.memory_space<vmem>>) attributes {dimension_semantics = [#tpu.dimension_semantics<parallel>], iteration_bounds = array<i64: 2>, scalar_prefetch = 0 : i64, scratch_operands = 0 : i64, tpu.core_type = #tpu.core_type<tc>, window_params = [{transform_indices = @transform_0, window_bounds = array<i64: 1, 8, 256>}, {pipeline_mode = #tpu.pipeline_mode<synchronous>, transform_indices = @transform_1, window_bounds = array<i64: 24, 8>}, {pipeline_mode = #tpu.pipeline_mode<synchronous>, transform_indices = @transform_2, window_bounds = array<i64: 24, 1>}, {pipeline_mode = #tpu.pipeline_mode<synchronous>, transform_indices = @transform_3, window_bounds = array<i64: 9, 24, 1>}, {pipeline_mode = #tpu.pipeline_mode<synchronous>, transform_indices = @transform_4, window_bounds = array<i64: 24, 1>}, {pipeline_mode = #tpu.pipeline_mode<synchronous>, transform_indices = @transform_5, window_bounds = array<i64: 9, 1, 256>}, {pipeline_mode = #tpu.pipeline_mode<synchronous>, transform_indices = @transform_6, window_bounds = array<i64: 8, 1>}, {pipeline_mode = #tpu.pipeline_mode<synchronous>, transform_indices = @transform_7, window_bounds = array<i64: 8, 8>}, {pipeline_mode = #tpu.pipeline_mode<synchronous>, transform_indices = @transform_8, window_bounds = array<i64: 8, 8>}, {pipeline_mode = #tpu.pipeline_mode<synchronous>, transform_indices = @transform_9, window_bounds = array<i64: 8, 1>}, {transform_indices = @transform_10, window_bounds = array<i64: 1, 8, 256>}]} {
    %c0 = arith.constant 0 : index
    %c0_0 = arith.constant 0 : index
    %c0_1 = arith.constant 0 : index
    %0 = vector.load %arg1[%c0, %c0_0, %c0_1] : memref<1x8x256xf32, #tpu.memory_space<vmem>>, vector<1x8x256xf32>
    %1 = vector.shape_cast %0 : vector<1x8x256xf32> to vector<8x256xf32>
    %c0_2 = arith.constant 0 : index
    %c0_3 = arith.constant 0 : index
    %2 = vector.load %arg2[%c0_2, %c0_3] : memref<24x8xf32, #tpu.memory_space<vmem>>, vector<24x8xf32>
    %cst = arith.constant dense<0.000000e+00> : vector<24x256xf32>
    %3 = tpu.matmul %2, %1, %cst {dimension_numbers = #tpu.dot_dimension_numbers<[1], [0], [0], [1], [0, 0, 1, 1], [], []>} : vector<24x8xf32>, vector<8x256xf32>, vector<24x256xf32> -> vector<24x256xf32>
    %c0_4 = arith.constant 0 : index
    %c0_5 = arith.constant 0 : index
    %4 = vector.load %arg3[%c0_4, %c0_5] : memref<24x1xf32, #tpu.memory_space<vmem>>, vector<24x1xf32>
    %5 = vector.broadcast %4 : vector<24x1xf32> to vector<24x256xf32>
    %6 = arith.addf %3, %5 : vector<24x256xf32>
    %cst_6 = arith.constant 0.000000e+00 : f32
    %7 = vector.broadcast %cst_6 : f32 to vector<24x256xf32>
    %c17_i32 = arith.constant 17 : i32
    %8 = tpu.dynamic_rotate %6 by %c17_i32 dim 1 : vector<24x256xf32>, i32 -> vector<24x256xf32>
    %c0_7 = arith.constant 0 : index
    %c0_8 = arith.constant 0 : index
    %c0_9 = arith.constant 0 : index
    %9 = vector.load %arg4[%c0_7, %c0_8, %c0_9] : memref<9x24x1xf32, #tpu.memory_space<vmem>>, vector<1x24x1xf32>
    %10 = vector.shape_cast %9 : vector<1x24x1xf32> to vector<24x1xf32>
    %11 = vector.broadcast %10 : vector<24x1xf32> to vector<24x256xf32>
    %12 = arith.mulf %8, %11 : vector<24x256xf32>
    %c0_10 = arith.constant 0 : index
    %c0_11 = arith.constant 0 : index
    %c0_12 = arith.constant 0 : index
    %13 = vector.load %arg6[%c0_10, %c0_11, %c0_12] : memref<9x1x256xf32, #tpu.memory_space<vmem>>, vector<1x1x256xf32>
    %14 = vector.shape_cast %13 : vector<1x1x256xf32> to vector<1x256xf32>
    %15 = vector.broadcast %14 : vector<1x256xf32> to vector<24x256xf32>
    %16 = arith.mulf %12, %15 : vector<24x256xf32>
    %17 = arith.addf %7, %16 : vector<24x256xf32>
    %c16_i32 = arith.constant 16 : i32
    %18 = tpu.dynamic_rotate %6 by %c16_i32 dim 1 : vector<24x256xf32>, i32 -> vector<24x256xf32>
    %c1 = arith.constant 1 : index
    %c0_13 = arith.constant 0 : index
    %c0_14 = arith.constant 0 : index
    %19 = vector.load %arg4[%c1, %c0_13, %c0_14] : memref<9x24x1xf32, #tpu.memory_space<vmem>>, vector<1x24x1xf32>
    %20 = vector.shape_cast %19 : vector<1x24x1xf32> to vector<24x1xf32>
    %21 = vector.broadcast %20 : vector<24x1xf32> to vector<24x256xf32>
    %22 = arith.mulf %18, %21 : vector<24x256xf32>
    %c1_15 = arith.constant 1 : index
    %c0_16 = arith.constant 0 : index
    %c0_17 = arith.constant 0 : index
    %23 = vector.load %arg6[%c1_15, %c0_16, %c0_17] : memref<9x1x256xf32, #tpu.memory_space<vmem>>, vector<1x1x256xf32>
    %24 = vector.shape_cast %23 : vector<1x1x256xf32> to vector<1x256xf32>
    %25 = vector.broadcast %24 : vector<1x256xf32> to vector<24x256xf32>
    %26 = arith.mulf %22, %25 : vector<24x256xf32>
    %27 = arith.addf %17, %26 : vector<24x256xf32>
    %c15_i32 = arith.constant 15 : i32
    %28 = tpu.dynamic_rotate %6 by %c15_i32 dim 1 : vector<24x256xf32>, i32 -> vector<24x256xf32>
    %c2 = arith.constant 2 : index
    %c0_18 = arith.constant 0 : index
    %c0_19 = arith.constant 0 : index
    %29 = vector.load %arg4[%c2, %c0_18, %c0_19] : memref<9x24x1xf32, #tpu.memory_space<vmem>>, vector<1x24x1xf32>
    %30 = vector.shape_cast %29 : vector<1x24x1xf32> to vector<24x1xf32>
    %31 = vector.broadcast %30 : vector<24x1xf32> to vector<24x256xf32>
    %32 = arith.mulf %28, %31 : vector<24x256xf32>
    %c2_20 = arith.constant 2 : index
    %c0_21 = arith.constant 0 : index
    %c0_22 = arith.constant 0 : index
    %33 = vector.load %arg6[%c2_20, %c0_21, %c0_22] : memref<9x1x256xf32, #tpu.memory_space<vmem>>, vector<1x1x256xf32>
    %34 = vector.shape_cast %33 : vector<1x1x256xf32> to vector<1x256xf32>
    %35 = vector.broadcast %34 : vector<1x256xf32> to vector<24x256xf32>
    %36 = arith.mulf %32, %35 : vector<24x256xf32>
    %37 = arith.addf %27, %36 : vector<24x256xf32>
    %c1_i32 = arith.constant 1 : i32
    %38 = tpu.dynamic_rotate %6 by %c1_i32 dim 1 : vector<24x256xf32>, i32 -> vector<24x256xf32>
    %c3 = arith.constant 3 : index
    %c0_23 = arith.constant 0 : index
    %c0_24 = arith.constant 0 : index
    %39 = vector.load %arg4[%c3, %c0_23, %c0_24] : memref<9x24x1xf32, #tpu.memory_space<vmem>>, vector<1x24x1xf32>
    %40 = vector.shape_cast %39 : vector<1x24x1xf32> to vector<24x1xf32>
    %41 = vector.broadcast %40 : vector<24x1xf32> to vector<24x256xf32>
    %42 = arith.mulf %38, %41 : vector<24x256xf32>
    %c3_25 = arith.constant 3 : index
    %c0_26 = arith.constant 0 : index
    %c0_27 = arith.constant 0 : index
    %43 = vector.load %arg6[%c3_25, %c0_26, %c0_27] : memref<9x1x256xf32, #tpu.memory_space<vmem>>, vector<1x1x256xf32>
    %44 = vector.shape_cast %43 : vector<1x1x256xf32> to vector<1x256xf32>
    %45 = vector.broadcast %44 : vector<1x256xf32> to vector<24x256xf32>
    %46 = arith.mulf %42, %45 : vector<24x256xf32>
    %47 = arith.addf %37, %46 : vector<24x256xf32>
    %c4 = arith.constant 4 : index
    %c0_28 = arith.constant 0 : index
    %c0_29 = arith.constant 0 : index
    %48 = vector.load %arg4[%c4, %c0_28, %c0_29] : memref<9x24x1xf32, #tpu.memory_space<vmem>>, vector<1x24x1xf32>
    %49 = vector.shape_cast %48 : vector<1x24x1xf32> to vector<24x1xf32>
    %50 = vector.broadcast %49 : vector<24x1xf32> to vector<24x256xf32>
    %51 = arith.mulf %6, %50 : vector<24x256xf32>
    %52 = arith.addf %47, %51 : vector<24x256xf32>
    %c255_i32 = arith.constant 255 : i32
    %53 = tpu.dynamic_rotate %6 by %c255_i32 dim 1 : vector<24x256xf32>, i32 -> vector<24x256xf32>
    %c5 = arith.constant 5 : index
    %c0_30 = arith.constant 0 : index
    %c0_31 = arith.constant 0 : index
    %54 = vector.load %arg4[%c5, %c0_30, %c0_31] : memref<9x24x1xf32, #tpu.memory_space<vmem>>, vector<1x24x1xf32>
    %55 = vector.shape_cast %54 : vector<1x24x1xf32> to vector<24x1xf32>
    %56 = vector.broadcast %55 : vector<24x1xf32> to vector<24x256xf32>
    %57 = arith.mulf %53, %56 : vector<24x256xf32>
    %c5_32 = arith.constant 5 : index
    %c0_33 = arith.constant 0 : index
    %c0_34 = arith.constant 0 : index
    %58 = vector.load %arg6[%c5_32, %c0_33, %c0_34] : memref<9x1x256xf32, #tpu.memory_space<vmem>>, vector<1x1x256xf32>
    %59 = vector.shape_cast %58 : vector<1x1x256xf32> to vector<1x256xf32>
    %60 = vector.broadcast %59 : vector<1x256xf32> to vector<24x256xf32>
    %61 = arith.mulf %57, %60 : vector<24x256xf32>
    %62 = arith.addf %52, %61 : vector<24x256xf32>
    %c241_i32 = arith.constant 241 : i32
    %63 = tpu.dynamic_rotate %6 by %c241_i32 dim 1 : vector<24x256xf32>, i32 -> vector<24x256xf32>
    %c6 = arith.constant 6 : index
    %c0_35 = arith.constant 0 : index
    %c0_36 = arith.constant 0 : index
    %64 = vector.load %arg4[%c6, %c0_35, %c0_36] : memref<9x24x1xf32, #tpu.memory_space<vmem>>, vector<1x24x1xf32>
    %65 = vector.shape_cast %64 : vector<1x24x1xf32> to vector<24x1xf32>
    %66 = vector.broadcast %65 : vector<24x1xf32> to vector<24x256xf32>
    %67 = arith.mulf %63, %66 : vector<24x256xf32>
    %c6_37 = arith.constant 6 : index
    %c0_38 = arith.constant 0 : index
    %c0_39 = arith.constant 0 : index
    %68 = vector.load %arg6[%c6_37, %c0_38, %c0_39] : memref<9x1x256xf32, #tpu.memory_space<vmem>>, vector<1x1x256xf32>
    %69 = vector.shape_cast %68 : vector<1x1x256xf32> to vector<1x256xf32>
    %70 = vector.broadcast %69 : vector<1x256xf32> to vector<24x256xf32>
    %71 = arith.mulf %67, %70 : vector<24x256xf32>
    %72 = arith.addf %62, %71 : vector<24x256xf32>
    %c240_i32 = arith.constant 240 : i32
    %73 = tpu.dynamic_rotate %6 by %c240_i32 dim 1 : vector<24x256xf32>, i32 -> vector<24x256xf32>
    %c7 = arith.constant 7 : index
    %c0_40 = arith.constant 0 : index
    %c0_41 = arith.constant 0 : index
    %74 = vector.load %arg4[%c7, %c0_40, %c0_41] : memref<9x24x1xf32, #tpu.memory_space<vmem>>, vector<1x24x1xf32>
    %75 = vector.shape_cast %74 : vector<1x24x1xf32> to vector<24x1xf32>
    %76 = vector.broadcast %75 : vector<24x1xf32> to vector<24x256xf32>
    %77 = arith.mulf %73, %76 : vector<24x256xf32>
    %c7_42 = arith.constant 7 : index
    %c0_43 = arith.constant 0 : index
    %c0_44 = arith.constant 0 : index
    %78 = vector.load %arg6[%c7_42, %c0_43, %c0_44] : memref<9x1x256xf32, #tpu.memory_space<vmem>>, vector<1x1x256xf32>
    %79 = vector.shape_cast %78 : vector<1x1x256xf32> to vector<1x256xf32>
    %80 = vector.broadcast %79 : vector<1x256xf32> to vector<24x256xf32>
    %81 = arith.mulf %77, %80 : vector<24x256xf32>
    %82 = arith.addf %72, %81 : vector<24x256xf32>
    %c239_i32 = arith.constant 239 : i32
    %83 = tpu.dynamic_rotate %6 by %c239_i32 dim 1 : vector<24x256xf32>, i32 -> vector<24x256xf32>
    %c8 = arith.constant 8 : index
    %c0_45 = arith.constant 0 : index
    %c0_46 = arith.constant 0 : index
    %84 = vector.load %arg4[%c8, %c0_45, %c0_46] : memref<9x24x1xf32, #tpu.memory_space<vmem>>, vector<1x24x1xf32>
    %85 = vector.shape_cast %84 : vector<1x24x1xf32> to vector<24x1xf32>
    %86 = vector.broadcast %85 : vector<24x1xf32> to vector<24x256xf32>
    %87 = arith.mulf %83, %86 : vector<24x256xf32>
    %c8_47 = arith.constant 8 : index
    %c0_48 = arith.constant 0 : index
    %c0_49 = arith.constant 0 : index
    %88 = vector.load %arg6[%c8_47, %c0_48, %c0_49] : memref<9x1x256xf32, #tpu.memory_space<vmem>>, vector<1x1x256xf32>
    %89 = vector.shape_cast %88 : vector<1x1x256xf32> to vector<1x256xf32>
    %90 = vector.broadcast %89 : vector<1x256xf32> to vector<24x256xf32>
    %91 = arith.mulf %87, %90 : vector<24x256xf32>
    %92 = arith.addf %82, %91 : vector<24x256xf32>
    %c0_50 = arith.constant 0 : index
    %c0_51 = arith.constant 0 : index
    %93 = vector.load %arg5[%c0_50, %c0_51] : memref<24x1xf32, #tpu.memory_space<vmem>>, vector<24x1xf32>
    %94 = vector.broadcast %93 : vector<24x1xf32> to vector<24x256xf32>
    %95 = arith.addf %92, %94 : vector<24x256xf32>
    %96 = vector.extract_strided_slice %95 {offsets = [0, 0], sizes = [8, 256], strides = [1, 1]} : vector<24x256xf32> to vector<8x256xf32>
    %97 = vector.extract_strided_slice %95 {offsets = [8, 0], sizes = [8, 256], strides = [1, 1]} : vector<24x256xf32> to vector<8x256xf32>
    %98 = vector.extract_strided_slice %95 {offsets = [16, 0], sizes = [8, 256], strides = [1, 1]} : vector<24x256xf32> to vector<8x256xf32>
    %99 = arith.mulf %96, %96 : vector<8x256xf32>
    %cst_52 = arith.constant dense<0.000000e+00> : vector<8xf32>
    %100 = vector.multi_reduction <add>, %99, %cst_52 [1] : vector<8x256xf32> to vector<8xf32>
    %101 = vector.shape_cast %100 : vector<8xf32> to vector<8x1xf32>
    %cst_53 = arith.constant 1.000000e-24 : f32
    %102 = vector.broadcast %cst_53 : f32 to vector<8x1xf32>
    %103 = arith.addf %101, %102 : vector<8x1xf32>
    %104 = math.rsqrt %103 : vector<8x1xf32>
    %105 = vector.broadcast %104 : vector<8x1xf32> to vector<8x256xf32>
    %106 = arith.mulf %96, %105 : vector<8x256xf32>
    %107 = arith.mulf %97, %97 : vector<8x256xf32>
    %cst_54 = arith.constant dense<0.000000e+00> : vector<8xf32>
    %108 = vector.multi_reduction <add>, %107, %cst_54 [1] : vector<8x256xf32> to vector<8xf32>
    %109 = vector.shape_cast %108 : vector<8xf32> to vector<8x1xf32>
    %cst_55 = arith.constant 1.000000e-24 : f32
    %110 = vector.broadcast %cst_55 : f32 to vector<8x1xf32>
    %111 = arith.addf %109, %110 : vector<8x1xf32>
    %112 = math.rsqrt %111 : vector<8x1xf32>
    %113 = vector.broadcast %112 : vector<8x1xf32> to vector<8x256xf32>
    %114 = arith.mulf %97, %113 : vector<8x256xf32>
    %cst_56 = arith.constant dense<0.000000e+00> : vector<8x8xf32>
    %115 = tpu.matmul %106, %114, %cst_56 {dimension_numbers = #tpu.dot_dimension_numbers<[1], [1], [0], [0], [0, 0, 1, 0], [], []>} : vector<8x256xf32>, vector<8x256xf32>, vector<8x8xf32> -> vector<8x8xf32>
    %c0_57 = arith.constant 0 : index
    %c0_58 = arith.constant 0 : index
    %116 = vector.load %arg7[%c0_57, %c0_58] : memref<8x1xf32, #tpu.memory_space<vmem>>, vector<8x1xf32>
    %117 = vector.broadcast %116 : vector<8x1xf32> to vector<8x8xf32>
    %118 = arith.mulf %115, %117 : vector<8x8xf32>
    %c0_59 = arith.constant 0 : index
    %c0_60 = arith.constant 0 : index
    %119 = vector.load %arg8[%c0_59, %c0_60] : memref<8x8xf32, #tpu.memory_space<vmem>>, vector<8x8xf32>
    %120 = arith.addf %118, %119 : vector<8x8xf32>
    %cst_61 = arith.constant dense<0xFF800000> : vector<8xf32>
    %121 = vector.multi_reduction <maximumf>, %120, %cst_61 [1] : vector<8x8xf32> to vector<8xf32>
    %122 = vector.shape_cast %121 : vector<8xf32> to vector<8x1xf32>
    %123 = vector.broadcast %122 : vector<8x1xf32> to vector<8x8xf32>
    %124 = arith.subf %120, %123 : vector<8x8xf32>
    %125 = math.exp %124 : vector<8x8xf32>
    %cst_62 = arith.constant dense<0.000000e+00> : vector<8xf32>
    %126 = vector.multi_reduction <add>, %125, %cst_62 [1] : vector<8x8xf32> to vector<8xf32>
    %127 = vector.shape_cast %126 : vector<8xf32> to vector<8x1xf32>
    %128 = vector.broadcast %127 : vector<8x1xf32> to vector<8x8xf32>
    %129 = arith.divf %125, %128 : vector<8x8xf32>
    %cst_63 = arith.constant dense<0.000000e+00> : vector<8x256xf32>
    %130 = tpu.matmul %129, %98, %cst_63 {dimension_numbers = #tpu.dot_dimension_numbers<[1], [0], [0], [1], [0, 0, 1, 1], [], []>} : vector<8x8xf32>, vector<8x256xf32>, vector<8x256xf32> -> vector<8x256xf32>
    %c0_64 = arith.constant 0 : index
    %c0_65 = arith.constant 0 : index
    %131 = vector.load %arg9[%c0_64, %c0_65] : memref<8x8xf32, #tpu.memory_space<vmem>>, vector<8x8xf32>
    %cst_66 = arith.constant dense<0.000000e+00> : vector<8x256xf32>
    %132 = tpu.matmul %131, %130, %cst_66 {dimension_numbers = #tpu.dot_dimension_numbers<[1], [0], [0], [1], [0, 0, 1, 1], [], []>} : vector<8x8xf32>, vector<8x256xf32>, vector<8x256xf32> -> vector<8x256xf32>
    %c0_67 = arith.constant 0 : index
    %c0_68 = arith.constant 0 : index
    %133 = vector.load %arg10[%c0_67, %c0_68] : memref<8x1xf32, #tpu.memory_space<vmem>>, vector<8x1xf32>
    %134 = vector.broadcast %133 : vector<8x1xf32> to vector<8x256xf32>
    %135 = arith.addf %132, %134 : vector<8x256xf32>
    %c0_69 = arith.constant 0 : index
    %c0_70 = arith.constant 0 : index
    %c0_71 = arith.constant 0 : index
    %136 = vector.load %arg11[%c0_69, %c0_70, %c0_71] : memref<1x8x256xf32, #tpu.memory_space<vmem>>, vector<1x8x256xf32>
    %137 = vector.shape_cast %136 : vector<1x8x256xf32> to vector<8x256xf32>
    %138 = vector.shape_cast %135 : vector<8x256xf32> to vector<1x8x256xf32>
    tpu.vector_store %arg11[%c0_69, %c0_70, %c0_71], %138 {strides = array<i32>} : memref<1x8x256xf32, #tpu.memory_space<vmem>>, vector<1x8x256xf32>,
    return
  }
  func.func @transform_0(%arg0: i32) -> (i32, i32, i32) {
    %c0_i32 = arith.constant 0 : i32
    %c0_i32_0 = arith.constant 0 : i32
    %c0_i32_1 = arith.constant 0 : i32
    return %arg0, %c0_i32, %c0_i32_0 : i32, i32, i32
  }
  func.func @transform_1(%arg0: i32) -> (i32, i32) {
    %c0_i32 = arith.constant 0 : i32
    %c0_i32_0 = arith.constant 0 : i32
    %c0_i32_1 = arith.constant 0 : i32
    return %c0_i32, %c0_i32_0 : i32, i32
  }
  func.func @transform_2(%arg0: i32) -> (i32, i32) {
    %c0_i32 = arith.constant 0 : i32
    %c0_i32_0 = arith.constant 0 : i32
    %c0_i32_1 = arith.constant 0 : i32
    return %c0_i32, %c0_i32_0 : i32, i32
  }
  func.func @transform_3(%arg0: i32) -> (i32, i32, i32) {
    %c0_i32 = arith.constant 0 : i32
    %c0_i32_0 = arith.constant 0 : i32
    %c0_i32_1 = arith.constant 0 : i32
    %c0_i32_2 = arith.constant 0 : i32
    return %c0_i32, %c0_i32_0, %c0_i32_1 : i32, i32, i32
  }
  func.func @transform_4(%arg0: i32) -> (i32, i32) {
    %c0_i32 = arith.constant 0 : i32
    %c0_i32_0 = arith.constant 0 : i32
    %c0_i32_1 = arith.constant 0 : i32
    return %c0_i32, %c0_i32_0 : i32, i32
  }
  func.func @transform_5(%arg0: i32) -> (i32, i32, i32) {
    %c0_i32 = arith.constant 0 : i32
    %c0_i32_0 = arith.constant 0 : i32
    %c0_i32_1 = arith.constant 0 : i32
    %c0_i32_2 = arith.constant 0 : i32
    return %c0_i32, %c0_i32_0, %c0_i32_1 : i32, i32, i32
  }
  func.func @transform_6(%arg0: i32) -> (i32, i32) {
    %c0_i32 = arith.constant 0 : i32
    %c0_i32_0 = arith.constant 0 : i32
    %c0_i32_1 = arith.constant 0 : i32
    return %c0_i32, %c0_i32_0 : i32, i32
  }
  func.func @transform_7(%arg0: i32) -> (i32, i32) {
    %c0_i32 = arith.constant 0 : i32
    %c0_i32_0 = arith.constant 0 : i32
    %c0_i32_1 = arith.constant 0 : i32
    return %c0_i32, %c0_i32_0 : i32, i32
  }
  func.func @transform_8(%arg0: i32) -> (i32, i32) {
    %c0_i32 = arith.constant 0 : i32
    %c0_i32_0 = arith.constant 0 : i32
    %c0_i32_1 = arith.constant 0 : i32
    return %c0_i32, %c0_i32_0 : i32, i32
  }
  func.func @transform_9(%arg0: i32) -> (i32, i32) {
    %c0_i32 = arith.constant 0 : i32
    %c0_i32_0 = arith.constant 0 : i32
    %c0_i32_1 = arith.constant 0 : i32
    return %c0_i32, %c0_i32_0 : i32, i32
  }
  func.func @transform_10(%arg0: i32) -> (i32, i32, i32) {
    %c0_i32 = arith.constant 0 : i32
    %c0_i32_0 = arith.constant 0 : i32
    %c0_i32_1 = arith.constant 0 : i32
    return %arg0, %c0_i32, %c0_i32_0 : i32, i32, i32
  }
}

</mosaic_0001>

<bundles_post_ra>
// kernel: attention_pallas.1
= control target key start
LH: loop header
LB: loop body
LE: loop exit
PB: predicated region body
PF: predicated region fallthrough
CT: control target
= control target key end

     0   :  { %s1553_s13 = smov 0   ;;  %s2201_s0 = inlined_call_operand.vmem [shape: f32[2,8,256], index: 0, kind: input, shape index: {}]   ;;  %s2202_s1 = inlined_call_operand.vmem [shape: f32[24,8], index: 1, kind: input, shape index: {}]   ;;  %s2203_s2 = inlined_call_operand.vmem [shape: f32[24,1], index: 2, kind: input, shape index: {}]   ;;  %s2204_s3 = inlined_call_operand.vmem [shape: f32[9,24,1], index: 3, kind: input, shape index: {}]   ;;  %s2205_s4 = inlined_call_operand.vmem [shape: f32[24,1], index: 4, kind: input, shape index: {}]   ;;  %s2206_s5 = inlined_call_operand.vmem [shape: f32[9,1,256], index: 5, kind: input, shape index: {}]   ;;  %s2207_s6 = inlined_call_operand.vmem [shape: f32[8,1], index: 6, kind: input, shape index: {}]   ;;  %s2208_s7 = inlined_call_operand.vmem [shape: f32[8,8], index: 7, kind: input, shape index: {}]   ;;  %s2209_s8 = inlined_call_operand.vmem [shape: f32[8,8], index: 8, kind: input, shape index: {}]   ;;  %s2210_s9 = inlined_call_operand.vmem [shape: f32[8,1], index: 9, kind: input, shape index: {}]   ;;  %s2211_s10 = inlined_call_operand.vmem [shape: f32[2,8,256], index: 10, kind: output, shape index: {}]  }
   0x1 LB: > { %s1403_s14 = sadd.s32 4294967295, %s1486_s13   ;;  %p1407_p0 = scmp.ge.s32.totalorder %s1486_s13, 1  ;;  %s1486_s13 = sphi %s1553_s13, %s20_s13  }
   0x2   : > { %p312_p1 = scmp.lt.s32.totalorder %s1486_s13, 3 }
   0x4   : > { %p313_p2 = pnand %p1407_p0, %p312_p1 }
   0x6   : > { %316 = sbr.rel (%p313_p2) target bundleno = 1561 (0x619), region = 60 }
   0xd   : > { %p350_p3 = scmp.lt.s32.totalorder %s1403_s14, 1  ;;  %v2212_v0 = vmov 0.0   ;;  %v1489_v1 = vmov 0   ;;  %v366_v2 = vld [vmem:[%s2203_s2 + $0x8] sm:$0xff]  ;;  %v365_v4 = vld [vmem:[%s2203_s2] sm:$0xff]  ;;  %vm383_vm0 = vcmask 64512  }
   0xe   : > { %457 = vmatprep.mubr.f32.mxu0 %v2212_v0  ;;  %1470 = vset.pattern.permute.xlu0 %v1489_v1  ;;  %v498_v3 = vld [vmem:[%s2204_s3 + $0x8] sm:$0xff]  ;;  %v1416_v5 = vld [vmem:[%s2204_s3 + $0x20] sm:$0xff]  ;;  %v1420_v9 = vld [vmem:[%s2204_s3 + $0x38] sm:$0xff]  ;;  %s1490_s29 = smov 15   ;;  %s1491_s30 = smov 17  }
   0xf   : > { %s2222_s14 = smov (!%p350_p3, %s1403_s14), 1  ;;  %375 = vperm.xlu0 %1470, %v366_v2   ;;  %1471 = vset.pattern.permute.xlu1 %v1489_v1  ;;  %v362_v8 = vld [vmem:[%s2202_s1] sm:$0xff]  ;;  %v363_v11 = vld [vmem:[%s2202_s1 + $0x8] sm:$0xff]  ;;  %v1415_v12 = vld [vmem:[%s2204_s3 + $0x18] sm:$0xff]  ;;  %s1492_s11 = smov 127  }
  0x10   : > { %507 = vperm.xlu1 %1471, %v498_v3   ;;  %s1450_s21 = sshll.u32 %s2222_s14, 4  ;;  %v497_v10 = vld [vmem:[%s2204_s3] sm:$0xff]  ;;  %v1424_v13 = vld [vmem:[%s2204_s3 + $0x50] sm:$0xff]  ;;  %v1423_v15 = vld [vmem:[%s2204_s3 + $0x48] sm:$0xff]  ;;  %s1493_s12 = smov 16  }
  0x11   : > { %s354_s26 = scalar_lea.vmem %s2201_s0, %s1450_s21  ;;  %v1419_v14 = vld [vmem:[%s2204_s3 + $0x30] sm:$0xff]  ;;  %v1428_v16 = vld [vmem:[%s2204_s3 + $0x68] sm:$0xff]  ;;  %v1431_v17 = vld [vmem:[%s2204_s3 + $0x80] sm:$0xff]  ;;  %s1494_s15 = smov 1  }
  0x12   : > { %v361_v6 = vld [vmem:[%s354_s26 + $0x8] sm:$0xff]  ;;  %v360_v7 = vld [vmem:[%s354_s26] sm:$0xff]  ;;  %v1435_v18 = vld [vmem:[%s2204_s3 + $0x98] sm:$0xff]  ;;  %s1495_s18 = smov 113   ;;  %s1496_s19 = smov 112  }
  0x13   : > { %370 = vperm.xlu0 %1470, %v365_v4   ;;  %393 = vmatprep.subr.mxu0 %v361_v6  ;;  %v1427_v19 = vld [vmem:[%s2204_s3 + $0x60] sm:$0xff]  ;;  %v1430_v20 = vld [vmem:[%s2204_s3 + $0x78] sm:$0xff]  ;;  %v1439_v21 = vld [vmem:[%s2204_s3 + $0xb0] sm:$0xff]  ;;  %s1497_s20 = smov 111   ;;  %s359_s28 = scalar_lea.vmem %s2211_s10, %s1450_s21 }
  0x14   : > { %575 = vperm.xlu1 %1471, %v1416_v5   ;;  %394 = vmatpush1.msra.mxu0 %v360_v7  ;;  %v1434_v22 = vld [vmem:[%s2204_s3 + $0x90] sm:$0xff]  ;;  %v1443_v23 = vld [vmem:[%s2204_s3 + $0xc8] sm:$0xff]  ;;  %v1442_v25 = vld [vmem:[%s2204_s3 + $0xc0] sm:$0xff] }
  0x15   : > { %1412 = vmatmul.mubr.msk.f32.vlgmr.msra.gmra.mrb[0].mxu0 %vm383_vm0, %v362_v8  ;;  %v1438_v24 = vld [vmem:[%s2204_s3 + $0xa8] sm:$0xff]  ;;  %v364_v34 = vld [vmem:[%s2202_s1 + $0x10] sm:$0xff]  ;;  %v1059_v39 = vld [vmem:[%s2205_s4] sm:$0xff] }
  0x16   : > { %463 = vmatprep.mubr.f32.mxu0 %v2212_v0  ;;  %v1060_v37 = vld [vmem:[%s2205_s4 + $0x8] sm:$0xff] }
  0x17   : > { %644 = vperm.xlu0 %1470, %v1420_v9  }
  0x18   : > { %502 = vperm.xlu1 %1471, %v497_v10   ;;  %v488_v10 = vlaneseq }
  0x19   : > { %1413 = vmatmul.mubr.msk.f32.gmra.mrb[2].mxu0 %vm383_vm0, %v363_v11 }
  0x1a   : > { %469 = vmatprep.mubr.f32.mxu0 %v2212_v0 }
  0x1b   : > { %570 = vperm.xlu0 %1470, %v1415_v12  }
  0x1c   : > { %713 = vperm.xlu1 %1471, %v1424_v13   ;;  %v524_v13 = vshrl.u32 %v488_v10, 7 }
  0x1d   : > { %1414 = vmatmul.mubr.msk.f32.gmra.mrb[4].mxu0 %vm383_vm0, %v364_v34 }
  0x1f   : > { %639 = vperm.xlu0 %1470, %v1419_v14  }
  0x20   : > { %708 = vperm.xlu1 %1471, %v1423_v15  }
  0x23   : > { %763 = vperm.xlu0 %1470, %v1428_v16   ;;  %v1780_v16 = vand.u32 127, %v488_v10 }
  0x24   : > { %813 = vperm.xlu1 %1471, %v1431_v17   ;;  %v1782_v17 = vsub.s32 0, %v524_v13 }
  0x25   : > { %vm490_vm1 = vcmp.lt.s32.totalorder %v1780_v16, 17  ;;  %vm557_vm2 = vcmp.lt.s32.totalorder %v1780_v16, 16  ;;  %vm695_vm3 = vcmp.lt.s32.totalorder %v1780_v16, 1  ;;  %vm626_vm4 = vcmp.lt.s32.totalorder %v1780_v16, 15 }
  0x26   : > { %vm864_vm5 = vcmp.lt.s32.totalorder %v1780_v16, 113  ;;  %vm795_vm6 = vcmp.lt.s32.totalorder %v1780_v16, 127  ;;  %vm933_vm7 = vcmp.lt.s32.totalorder %v1780_v16, 112  ;;  %vm1002_vm8 = vcmp.lt.s32.totalorder %v1780_v16, 111 }
  0x27   : > { %882 = vperm.xlu0 %1470, %v1435_v18   ;;  %v521_v18 = vld [vmem:[%s2206_s5] sm:$0x3] }
  0x28   : > { %758 = vperm.xlu1 %1471, %v1427_v19   ;;  %v1787_v19 = vsub.s32 1, %v524_v13 }
  0x2b   : > { %808 = vperm.xlu0 %1470, %v1430_v20   ;;  %v1418_v20 = vld [vmem:[%s2206_s5 + $0x2] sm:$0x3] }
  0x2c   : > { %951 = vperm.xlu1 %1471, %v1439_v21  }
  0x2f   : > { %877 = vperm.xlu0 %1470, %v1434_v22  }
  0x30   : > { %1020 = vperm.xlu1 %1471, %v1443_v23   ;;  %v1796_v23 = vrot.slane %v521_v18, %v1782_v17 }
  0x33   : > { %946 = vperm.xlu0 %1470, %v1438_v24   ;;  %v1426_v24 = vld [vmem:[%s2206_s5 + $0x6] sm:$0x3] }
  0x34   : > { %1015 = vperm.xlu1 %1471, %v1442_v25   ;;  %v1802_v25 = vrot.slane %v521_v18, %v1787_v19  ;;  %v1827_v10 = vrot.slane %v1426_v24, %v1782_v17 }
  0x8e   : > { %v376_v26 = vpop.permute.xlu0 %375 }
  0x8f   : > { %v1713_v38 = vpop.permute.xlu1 %507 }
  0x92   : > { %v371_v27 = vpop.permute.xlu0 %370 }
  0x93   : > { %v1722_v40 = vpop.permute.xlu1 %575 }
  0x96   : > { %v1726_v41 = vpop.permute.xlu0 %644 }
  0x97   : > { %v1728_v42 = vpop.permute.xlu1 %502 }
  0x9a   : > { %v1730_v43 = vpop.permute.xlu0 %570 }
  0x9b   : > { %v1732_v44 = vpop.permute.xlu1 %713 }
  0x9e   : > { %v1734_v45 = vpop.permute.xlu0 %639 }
  0x9f   : > { %v1736_v46 = vpop.permute.xlu1 %708 }
  0xa2   : > { %v1738_v47 = vpop.permute.xlu0 %763 }
  0xa3   : > { %v1740_v48 = vpop.permute.xlu1 %813 }
  0xa6   : > { %v1742_v49 = vpop.permute.xlu0 %882 }
  0xa7   : > { %v759_v50 = vpop.permute.xlu1 %758 }
  0xaa   : > { %v1744_v51 = vpop.permute.xlu0 %808 }
  0xab   : > { %v1746_v52 = vpop.permute.xlu1 %951 }
  0xae   : > { %v1748_v53 = vpop.permute.xlu0 %877 }
  0xaf   : > { %v1750_v54 = vpop.permute.xlu1 %1020 }
  0xb2   : > { %v1752_v55 = vpop.permute.xlu0 %946 }
  0xb3   : > { %2216 = vst [vmem:[#allocation2_spill] sm:$0xff] %v1752_v55  ;;  %v1754_v56 = vpop.permute.xlu1 %1015 }
  0xb4   : > { %2217 = vst [vmem:[#allocation3_spill] sm:$0xff] %v1754_v56 }
  0xe8   : > { %v459_v28 = vpop.f32.mrb[0].mxu0 }
  0xe9   : > { %v1640_v29 = vadd.f32 %v459_v28, %v371_v27  ;;  %v461_v30 = vpop.f32.mrb[1].mxu0  ;;  %v1422_v28 = vld [vmem:[%s2206_s5 + $0x4] sm:$0x3] }
  0xea   : > { %v1650_v33 = vadd.f32 %v461_v30, %v371_v27  ;;  %v1809_v27 = vrot.slane %v1418_v20, %v1787_v19  ;;  %v1837_v13 = vrot.slane %v1422_v28, %v1782_v17  ;;  %v1840_v18 = vrot.slane %v1422_v28, %v1787_v19 }
  0xeb   : > { %614 = vrot.lane.b32.xlu1 %v1640_v29, %s1490_s29  ;;  %476 = vrot.lane.b32.xlu0 %v1640_v29, %s1491_s30  ;;  %v1815_v30 = vmul.f32 %v759_v50, %v1640_v29 }
  0xec   : > { %v465_v31 = vpop.f32.mrb[2].mxu0 }
  0xed   : > { %v467_v32 = vpop.f32.mrb[3].mxu0  ;;  %v1672_v35 = vadd.f32 %v465_v31, %v376_v26  ;;  %v1818_v31 = vmul.f32 %v759_v50, %v1650_v33 }
  0xee   : > { %v1690_v36 = vadd.f32 %v467_v32, %v376_v26  ;;  %v1806_v26 = vrot.slane %v1418_v20, %v1782_v17 }
  0xef   : > { %783 = vrot.lane.b32.xlu1 %v1640_v29, %s1492_s11  ;;  %545 = vrot.lane.b32.xlu0 %v1640_v29, %s1493_s12 }
  0xf3   : > { %482 = vrot.lane.b32.xlu1 %v1650_v33, %s1491_s30  ;;  %683 = vrot.lane.b32.xlu0 %v1640_v29, %s1494_s15 }
  0xf7   : > { %551 = vrot.lane.b32.xlu1 %v1650_v33, %s1493_s12  ;;  %852 = vrot.lane.b32.xlu0 %v1640_v29, %s1495_s18 }
  0xfb   : > { %689 = vrot.lane.b32.xlu1 %v1650_v33, %s1494_s15  ;;  %620 = vrot.lane.b32.xlu0 %v1650_v33, %s1490_s29 }
  0xff   : > { %858 = vrot.lane.b32.xlu1 %v1650_v33, %s1495_s18  ;;  %789 = vrot.lane.b32.xlu0 %v1650_v33, %s1492_s11 }
 0x103   : > { %478 = vrot.lane.b32.xlu1 %v1672_v35, %s1491_s30  ;;  %616 = vrot.lane.b32.xlu0 %v1672_v35, %s1490_s29 }
 0x107   : > { %547 = vrot.lane.b32.xlu1 %v1672_v35, %s1493_s12  ;;  %685 = vrot.lane.b32.xlu0 %v1672_v35, %s1494_s15 }
 0x10b   : > { %785 = vrot.lane.b32.xlu1 %v1672_v35, %s1492_s11  ;;  %923 = vrot.lane.b32.xlu0 %v1672_v35, %s1496_s19 }
 0x10f   : > { %854 = vrot.lane.b32.xlu1 %v1672_v35, %s1495_s18  ;;  %992 = vrot.lane.b32.xlu0 %v1672_v35, %s1497_s20 }
 0x113   : > { %921 = vrot.lane.b32.xlu1 %v1640_v29, %s1496_s19  ;;  %484 = vrot.lane.b32.xlu0 %v1690_v36, %s1491_s30 }
 0x117   : > { %622 = vrot.lane.b32.xlu1 %v1690_v36, %s1490_s29  ;;  %553 = vrot.lane.b32.xlu0 %v1690_v36, %s1493_s12 }
 0x11b   : > { %691 = vrot.lane.b32.xlu1 %v1690_v36, %s1494_s15  ;;  %1069 = vperm.xlu0 %1470, %v1060_v37  }
 0x11f   : > { %990 = vrot.lane.b32.xlu1 %v1640_v29, %s1497_s20  ;;  %791 = vrot.lane.b32.xlu0 %v1690_v36, %s1492_s11  ;;  %v1830_v29 = vrot.slane %v1426_v24, %v1787_v19  ;;  %v1851_v24 = vmul.f32 %v1738_v47, %v1672_v35  ;;  %v1433_v35 = vld [vmem:[%s2206_s5 + $0xa] sm:$0x3] }
 0x123   : > { %929 = vrot.lane.b32.xlu1 %v1690_v36, %s1496_s19  ;;  %860 = vrot.lane.b32.xlu0 %v1690_v36, %s1495_s18 }
 0x127   : > { %998 = vrot.lane.b32.xlu1 %v1690_v36, %s1497_s20  ;;  %927 = vrot.lane.b32.xlu0 %v1650_v33, %s1496_s19 }
 0x12b   : > { %1064 = vperm.xlu1 %1471, %v1059_v39   ;;  %996 = vrot.lane.b32.xlu0 %v1650_v33, %s1497_s20 }
 0x15d   : > { %v615_v57 = vpop.permute.xlu1 %614  ;;  %v477_v58 = vpop.permute.xlu0 %476 }
 0x161   : > { %v1756_v59 = vpop.permute.xlu1 %783  ;;  %v546_v60 = vpop.permute.xlu0 %545 }
 0x165   : > { %v483_v61 = vpop.permute.xlu1 %482  ;;  %v1758_v62 = vpop.permute.xlu0 %683 }
 0x166   : > { %v491_v37 = vsel %vm490_vm1, %v477_v58, %v483_v61  ;;  %v494_v39 = vsel %vm490_vm1, %v483_v61, %v477_v58  ;;  %v1437_v58 = vld [vmem:[%s2206_s5 + $0xc] sm:$0x3] }
 0x167   : > { %v516_v28 = vmul.f32 %v1728_v42, %v491_v37 }
 0x169   : > { %v552_v63 = vpop.permute.xlu1 %551  ;;  %v1760_v1 = vpop.permute.xlu0 %852 }
 0x16a   : > { %v558_v33 = vsel %vm557_vm2, %v546_v60, %v552_v63  ;;  %v561_v50 = vsel %vm557_vm2, %v552_v63, %v546_v60  ;;  %v1855_v60 = vmul.f32 %v1738_v47, %v1690_v36  ;;  %v515_v63 = vmul.f32 %v1728_v42, %v494_v39 }
 0x16b   : > { %v584_v36 = vmul.f32 %v1730_v43, %v558_v33 }
 0x16d   : > { %v1762_v2 = vpop.permute.xlu1 %689  ;;  %v621_v3 = vpop.permute.xlu0 %620 }
 0x16e   : > { %v627_v0 = vsel %vm626_vm4, %v615_v57, %v621_v3  ;;  %v630_v56 = vsel %vm626_vm4, %v621_v3, %v615_v57  ;;  %v1877_v57 = vrot.slane %v1437_v58, %v1787_v19 }
 0x16f   : > { %v653_v33 = vmul.f32 %v1734_v45, %v627_v0 }
 0x171   : > { %v1764_v4 = vpop.permute.xlu1 %858  ;;  %v1766_v5 = vpop.permute.xlu0 %789 }
 0x175   : > { %v479_v6 = vpop.permute.xlu1 %478  ;;  %v1768_v7 = vpop.permute.xlu0 %616 }
 0x179   : > { %v548_v8 = vpop.permute.xlu1 %547  ;;  %v1770_v9 = vpop.permute.xlu0 %685 }
 0x17d   : > { %v1772_v11 = vpop.permute.xlu1 %785  ;;  %v1774_v12 = vpop.permute.xlu0 %923 }
 0x181   : > { %v1776_v14 = vpop.permute.xlu1 %854  ;;  %v1778_v15 = vpop.permute.xlu0 %992 }
 0x185   : > { %v1792_v21 = vpop.permute.xlu1 %921  ;;  %v485_v22 = vpop.permute.xlu0 %484 }
 0x186   : > { %v492_v47 = vsel %vm490_vm1, %v479_v6, %v485_v22  ;;  %v495_v42 = vsel %vm490_vm1, %v485_v22, %v479_v6  ;;  %v1888_v6 = vrot.slane %v1433_v35, %v1787_v19  ;;  %v533_v22 = vmul.f32 %v1796_v23, %v515_v63 }
 0x187   : > { %v517_v55 = vmul.f32 %v1713_v38, %v495_v42 }
 0x189   : > { %v623_v32 = vpop.permute.xlu1 %622  ;;  %v554_v34 = vpop.permute.xlu0 %553 }
 0x18a   : > { %v559_v61 = vsel %vm557_vm2, %v548_v8, %v554_v34  ;;  %v562_v20 = vsel %vm557_vm2, %v554_v34, %v548_v8  ;;  %v583_v8 = vmul.f32 %v1730_v43, %v561_v50  ;;  %v1874_v34 = vrot.slane %v1437_v58, %v1782_v17 }
 0x18b   : > { %v585_v3 = vmul.f32 %v1722_v40, %v562_v20  ;;  %v586_v37 = vmul.f32 %v1722_v40, %v559_v61  ;;  %v652_v43 = vmul.f32 %v1734_v45, %v630_v56  ;;  %v1885_v50 = vrot.slane %v1433_v35, %v1782_v17 }
 0x18c   : > { %v534_v58 = vmul.f32 %v1802_v25, %v516_v28  ;;  %v518_v20 = vmul.f32 %v1713_v38, %v492_v47  ;;  %v602_v40 = vmul.f32 %v1806_v26, %v583_v8  ;;  %v603_v56 = vmul.f32 %v1809_v27, %v584_v36 }
 0x18d   : > { %v692_v39 = vpop.permute.xlu1 %691  ;;  %v628_v0 = vsel %vm626_vm4, %v1768_v7, %v623_v32  ;;  %v631_v45 = vsel %vm626_vm4, %v623_v32, %v1768_v7  ;;  %v696_v61 = vsel %vm695_vm3, %v1758_v62, %v1762_v2  ;;  %v699_v38 = vsel %vm695_vm3, %v1762_v2, %v1758_v62 }
 0x18e   : > { %v604_v63 = vmul.f32 %v1806_v26, %v585_v3  ;;  %v605_v28 = vmul.f32 %v1809_v27, %v586_v37  ;;  %v671_v35 = vmul.f32 %v1837_v13, %v652_v43  ;;  %v672_v8 = vmul.f32 %v1840_v18, %v653_v33  ;;  %v1441_v3 = vld [vmem:[%s2206_s5 + $0xe] sm:$0x3] }
 0x18f   : > { %v697_v7 = vsel %vm695_vm3, %v1770_v9, %v692_v39  ;;  %v700_v32 = vsel %vm695_vm3, %v692_v39, %v1770_v9  ;;  %v535_v36 = vmul.f32 %v1796_v23, %v517_v55  ;;  %v536_v62 = vmul.f32 %v1802_v25, %v518_v20 }
 0x190   : > { %v654_v2 = vmul.f32 %v1726_v41, %v631_v45  ;;  %v655_v47 = vmul.f32 %v1726_v41, %v628_v0  ;;  %v608_v37 = vadd.f32 %v602_v40, %v533_v22  ;;  %v609_v43 = vadd.f32 %v603_v56, %v534_v58 }
 0x191   : > { %v1924_v42 = vpop.permute.xlu1 %990  ;;  %v721_v33 = vmul.f32 %v1736_v46, %v699_v38  ;;  %v722_v9 = vmul.f32 %v1736_v46, %v696_v61  ;;  %v610_v39 = vadd.f32 %v604_v63, %v535_v36  ;;  %v611_v55 = vadd.f32 %v605_v28, %v536_v62  ;;  %v1445_v38 = vld [vmem:[%s2206_s5 + $0x10] sm:$0x3] }
 0x192   : > { %v723_v20 = vmul.f32 %v1732_v44, %v700_v32  ;;  %v724_v45 = vmul.f32 %v1732_v44, %v697_v7  ;;  %v865_v41 = vsel %vm864_vm5, %v1760_v1, %v1764_v4  ;;  %v868_v22 = vsel %vm864_vm5, %v1764_v4, %v1760_v1 }
 0x193   : > { %v1943_v46 = vrot.slane %v1441_v3, %v1782_v17  ;;  %v677_v58 = vadd.f32 %v671_v35, %v608_v37  ;;  %v678_v40 = vadd.f32 %v672_v8, %v609_v43  ;;  %v673_v56 = vmul.f32 %v1837_v13, %v654_v2 }
 0x194   : > { %v674_v44 = vmul.f32 %v1840_v18, %v655_v47  ;;  %v740_v0 = vmul.f32 %v1827_v10, %v721_v33  ;;  %v741_v61 = vmul.f32 %v1830_v29, %v722_v9  ;;  %v796_v1 = vsel %vm795_vm6, %v1756_v59, %v1766_v5 }
 0x195   : > { %v799_v4 = vsel %vm795_vm6, %v1766_v5, %v1756_v59  ;;  %v679_v28 = vadd.f32 %v673_v56, %v610_v39  ;;  %v742_v8 = vmul.f32 %v1827_v10, %v723_v20  ;;  %v743_v7 = vmul.f32 %v1830_v29, %v724_v45  ;;  %v930_v32 = vpop.permute.xlu1 %929 }
 0x196   : > { %v680_v35 = vadd.f32 %v674_v44, %v611_v55  ;;  %v890_v36 = vmul.f32 %v1748_v53, %v865_v41  ;;  %v891_v62 = vmul.f32 %v1748_v53, %v868_v22  ;;  %v1967_v2 = vrot.slane %v1441_v3, %v1787_v19 }
 0x197   : > { %v746_v59 = vadd.f32 %v740_v0, %v677_v58  ;;  %v747_v5 = vadd.f32 %v741_v61, %v678_v40  ;;  %v1971_v47 = vrot.slane %v1445_v38, %v1782_v17  ;;  %v1974_v37 = vrot.slane %v1445_v38, %v1787_v19 }
 0x198   : > { %v821_v43 = vmul.f32 %v1744_v51, %v796_v1  ;;  %v822_v33 = vmul.f32 %v1744_v51, %v799_v4  ;;  %v935_v53 = vsel %vm933_vm7, %v1774_v12, %v930_v32  ;;  %v938_v3 = vsel %vm933_vm7, %v930_v32, %v1774_v12 }
 0x199   : > { %v748_v39 = vadd.f32 %v742_v8, %v679_v28  ;;  %v749_v55 = vadd.f32 %v743_v7, %v680_v35  ;;  %v909_v51 = vmul.f32 %v1874_v34, %v890_v36  ;;  %v910_v20 = vmul.f32 %v1877_v57, %v891_v62  ;;  %v999_v56 = vpop.permute.xlu1 %998 }
 0x19a   : > { %v1960_v63 = vpop.permute.xlu0 %1069  ;;  %v778_v12 = vadd.f32 %v1818_v31, %v747_v5  ;;  %v777_v22 = vadd.f32 %v1815_v30, %v746_v59  ;;  %v961_v58 = vmul.f32 %v1746_v52, %v935_v53  ;;  %v962_v40 = vmul.f32 %v1746_v52, %v938_v3  ;;  %v2218_v3 = vld [vmem:[#allocation2_spill] sm:$0xff] }
 0x19b   : > { %v840_v44 = vmul.f32 %v1885_v50, %v821_v43  ;;  %v780_v31 = vadd.f32 %v1855_v60, %v749_v55  ;;  %v1004_v4 = vsel %vm1002_vm8, %v1778_v15, %v999_v56  ;;  %v1007_v38 = vsel %vm1002_vm8, %v999_v56, %v1778_v15  ;;  %v2219_v56 = vld [vmem:[#allocation3_spill] sm:$0xff] }
 0x19c   : > { %v980_v8 = vmul.f32 %v1943_v46, %v961_v58  ;;  %v981_v7 = vmul.f32 %v1967_v2, %v962_v40  ;;  %v1030_v5 = vmul.f32 %v1750_v54, %v1004_v4  ;;  %v1031_v15 = vmul.f32 %v1750_v54, %v1007_v38 }
 0x19d   : > { %v846_v28 = vadd.f32 %v840_v44, %v777_v22 }
 0x19e   : > { %v792_v9 = vpop.permute.xlu0 %791  ;;  %v1049_v22 = vmul.f32 %v1971_v47, %v1030_v5  ;;  %v1050_v58 = vmul.f32 %v1974_v37, %v1031_v15  ;;  %v1417_v5 = vld [vmem:[%s2204_s3 + $0x28] sm:$0xff]  ;;  %v1425_v15 = vld [vmem:[%s2204_s3 + $0x58] sm:$0xff] }
 0x19f   : > { %v797_v17 = vsel %vm795_vm6, %v1772_v11, %v792_v9  ;;  %v800_v19 = vsel %vm795_vm6, %v792_v9, %v1772_v11  ;;  %v841_v11 = vmul.f32 %v1888_v6, %v822_v33 }
 0x1a0   : > { %v823_v45 = vmul.f32 %v1740_v48, %v797_v17  ;;  %v824_v41 = vmul.f32 %v1740_v48, %v800_v19  ;;  %v779_v48 = vadd.f32 %v1851_v24, %v748_v39  ;;  %v915_v17 = vadd.f32 %v909_v51, %v846_v28 }
 0x1a1   : > { %v847_v35 = vadd.f32 %v841_v11, %v778_v12 }
 0x1a2   : > { %v842_v0 = vmul.f32 %v1885_v50, %v823_v45  ;;  %v843_v61 = vmul.f32 %v1888_v6, %v824_v41  ;;  %v861_v1 = vpop.permute.xlu0 %860 }
 0x1a3   : > { %v866_v30 = vsel %vm864_vm5, %v1776_v14, %v861_v1  ;;  %v869_v52 = vsel %vm864_vm5, %v861_v1, %v1776_v14  ;;  %v916_v55 = vadd.f32 %v910_v20, %v847_v35 }
 0x1a4   : > { %v892_v24 = vmul.f32 %v1742_v49, %v866_v30  ;;  %v893_v60 = vmul.f32 %v1742_v49, %v869_v52  ;;  %v848_v32 = vadd.f32 %v842_v0, %v779_v48  ;;  %v849_v14 = vadd.f32 %v843_v61, %v780_v31 }
 0x1a6   : > { %v911_v36 = vmul.f32 %v1874_v34, %v892_v24  ;;  %v912_v62 = vmul.f32 %v1877_v57, %v893_v60  ;;  %v928_v59 = vpop.permute.xlu0 %927 }
 0x1a7   : > { %v934_v49 = vsel %vm933_vm7, %v1792_v21, %v928_v59  ;;  %v937_v43 = vsel %vm933_vm7, %v928_v59, %v1792_v21  ;;  %v499_v59 = vld [vmem:[%s2204_s3 + $0x10] sm:$0xff] }
 0x1a8   : > { %v917_v33 = vadd.f32 %v911_v36, %v848_v32  ;;  %v918_v53 = vadd.f32 %v912_v62, %v849_v14  ;;  %v959_v9 = vmul.f32 %v2218_v3, %v934_v49  ;;  %v960_v39 = vmul.f32 %v2218_v3, %v937_v43  ;;  %v367_v14 = vld [vmem:[%s2203_s2 + $0x10] sm:$0xff]  ;;  %v471_v36 = vpop.f32.mrb[4].mxu0 }
 0x1a9   : > { %v473_v62 = vpop.f32.mrb[5].mxu0 }
 0x1aa   : > { %v986_v19 = vadd.f32 %v980_v8, %v917_v33  ;;  %v987_v45 = vadd.f32 %v981_v7, %v918_v53  ;;  %v978_v54 = vmul.f32 %v1943_v46, %v959_v9  ;;  %v979_v41 = vmul.f32 %v1967_v2, %v960_v39  ;;  %v997_v12 = vpop.permute.xlu0 %996  ;;  %v1065_v38 = vpop.permute.xlu1 %1064 }
 0x1ab   : > { %v1003_v21 = vsel %vm1002_vm8, %v1924_v42, %v997_v12  ;;  %v1006_v20 = vsel %vm1002_vm8, %v997_v12, %v1924_v42  ;;  %v2220_v12 = vmov 0.0  }
 0x1ac   : > { %v984_v51 = vadd.f32 %v978_v54, %v915_v17  ;;  %v985_v40 = vadd.f32 %v979_v41, %v916_v55  ;;  %v1028_v44 = vmul.f32 %v2219_v56, %v1003_v21  ;;  %v1029_v11 = vmul.f32 %v2219_v56, %v1006_v20  ;;  %v1436_v21 = vld [vmem:[%s2204_s3 + $0xa0] sm:$0xff]  ;;  %v1440_v20 = vld [vmem:[%s2204_s3 + $0xb8] sm:$0xff] }
 0x1ad   : > { %v1055_v0 = vadd.f32 %v1049_v22, %v986_v19  ;;  %v1056_v61 = vadd.f32 %v1050_v58, %v987_v45  ;;  %v1429_v22 = vld [vmem:[%s2204_s3 + $0x70] sm:$0xff]  ;;  %v1432_v58 = vld [vmem:[%s2204_s3 + $0x88] sm:$0xff] }
 0x1ae   : > { %v1047_v1 = vmul.f32 %v1971_v47, %v1028_v44  ;;  %v1048_v48 = vmul.f32 %v1974_v37, %v1029_v11  ;;  %v1178_v44 = vld [vmem:[%s2208_s7] sm:$0xff] }
 0x1af   : > { %v1079_v31 = vadd.f32 %v1960_v63, %v1055_v0  ;;  %v1080_v30 = vadd.f32 %v1960_v63, %v1056_v61  ;;  %v1171_v63 = vld [vmem:[%s2207_s6] sm:$0xff] }
 0x1b0   : > { %v1053_v52 = vadd.f32 %v1047_v1, %v984_v51  ;;  %v1054_v4 = vadd.f32 %v1048_v48, %v985_v40  ;;  %v1061_v51 = vld [vmem:[%s2205_s4 + $0x10] sm:$0xff]  ;;  %v1421_v48 = vld [vmem:[%s2204_s3 + $0x40] sm:$0xff] }
 0x1b1   : > { %v1092_v42 = vmul.f32 %v1079_v31, %v1079_v31  ;;  %v1093_v24 = vmul.f32 %v1080_v30, %v1080_v30 }
 0x1b2   : > { %v1077_v60 = vadd.f32 %v1065_v38, %v1053_v52  ;;  %v1078_v28 = vadd.f32 %v1065_v38, %v1054_v4 }
 0x1b3   : > { %v1094_v35 = vadd.f32 %v1093_v24, %v1092_v42  ;;  %v1266_v24 = vld [vmem:[%s2210_s9] sm:$0xff] }
 0x1b4   : > { %v1083_v8 = vmul.f32 %v1077_v60, %v1077_v60  ;;  %v1084_v7 = vmul.f32 %v1078_v28, %v1078_v28 }
 0x1b5   : > { %1095 = vadd.xlane.f32.xlu0 %v1094_v35 }
 0x1b6   : > { %v1085_v32 = vadd.f32 %v1084_v7, %v1083_v8 }
 0x1b8   : > { %1086 = vadd.xlane.f32.xlu1 %v1085_v32 }
 0x1c9   : > { %380 = vperm.xlu1 %1471, %v367_v14  }
 0x1cb   : > { %1174 = vperm.xlu0 %1470, %v1171_v63  }
 0x1cf   : > { %512 = vperm.xlu0 %1470, %v499_v59  }
 0x1d3   : > { %580 = vperm.xlu0 %1470, %v1417_v5  }
 0x1d7   : > { %718 = vperm.xlu0 %1470, %v1425_v15  }
 0x242   : > { %v1096_v49 = vpop.xlane.xlu0 %1095 }
 0x243   : > { %v1097_v43 = vadd.f32 1e-24, %v1096_v49 }
 0x245   : > { %1472 = vrsqrt.f32 %v1097_v43  ;;  %v1087_v33 = vpop.xlane.xlu1 %1086 }
 0x246   : > { %v1088_v53 = vadd.f32 1e-24, %v1087_v33 }
 0x248   : > { %1474 = vrsqrt.f32 %v1088_v53 }
 0x249   : > { %v381_v3 = vpop.permute.xlu1 %380 }
 0x24a   : > { %v2063_v9 = vadd.f32 %v471_v36, %v381_v3  ;;  %v2067_v39 = vadd.f32 %v473_v62, %v381_v3  ;;  %v1175_v40 = vpop.permute.xlu0 %1174 }
 0x24c   : > { %480 = vrot.lane.b32.xlu0 %v2063_v9, %s1491_s30 }
 0x24f   : > { %v1473_v55 = vpop.eup %1472 }
 0x250   : > { %486 = vrot.lane.b32.xlu0 %v2067_v39, %s1491_s30  ;;  %v1100_v17 = vmul.f32 %v1473_v55, %v1080_v30  ;;  %v1099_v19 = vmul.f32 %v1473_v55, %v1079_v31  ;;  %v1444_v31 = vld [vmem:[%s2204_s3 + $0xd0] sm:$0xff] }
 0x252   : > { %v1475_v45 = vpop.eup %1474  ;;  %1101 = vmatprep.subr.mxu1 %v1100_v17 }
 0x253   : > { %1102 = vmatpush1.xpose.msra.mxu1 %v1099_v19  ;;  %v1091_v54 = vmul.f32 %v1475_v45, %v1078_v28  ;;  %v1090_v41 = vmul.f32 %v1475_v45, %v1077_v60  ;;  %v513_v60 = vpop.permute.xlu0 %512 }
 0x254   : > { %549 = vrot.lane.b32.xlu0 %v2063_v9, %s1493_s12 }
 0x255   : > { %1165 = vmatprep.mubr.f32.mxu1 %v1091_v54 }
 0x256   : > { %1166 = vmatmul.mubr.f32.vlgmr.msra.gmra.mrb[0].mxu1 %v1090_v41 }
 0x257   : > { %1258 = vmatprep.mubr.f32.mxu1 %v2220_v12  ;;  %v581_v28 = vpop.permute.xlu0 %580 }
 0x258   : > { %555 = vrot.lane.b32.xlu0 %v2067_v39, %s1493_s12 }
 0x25b   : > { %v719_v35 = vpop.permute.xlu0 %718 }
 0x25c   : > { %618 = vrot.lane.b32.xlu0 %v2063_v9, %s1490_s29 }
 0x260   : > { %624 = vrot.lane.b32.xlu0 %v2067_v39, %s1490_s29 }
 0x264   : > { %768 = vperm.xlu0 %1470, %v1429_v22  }
 0x268   : > { %818 = vperm.xlu0 %1470, %v1432_v58  }
 0x26c   : > { %687 = vrot.lane.b32.xlu0 %v2063_v9, %s1494_s15 }
 0x270   : > { %887 = vperm.xlu0 %1470, %v1436_v21  }
 0x274   : > { %956 = vperm.xlu0 %1470, %v1440_v20  }
 0x278   : > { %787 = vrot.lane.b32.xlu0 %v2063_v9, %s1492_s11 }
 0x27c   : > { %793 = vrot.lane.b32.xlu0 %v2067_v39, %s1492_s11 }
 0x280   : > { %856 = vrot.lane.b32.xlu0 %v2063_v9, %s1495_s18 }
 0x284   : > { %925 = vrot.lane.b32.xlu0 %v2063_v9, %s1496_s19 }
 0x288   : > { %994 = vrot.lane.b32.xlu0 %v2063_v9, %s1497_s20 }
 0x28c   : > { %1074 = vperm.xlu0 %1470, %v1061_v51  }
 0x2be   : > { %v481_v8 = vpop.permute.xlu0 %480 }
 0x2c2   : > { %v487_v7 = vpop.permute.xlu0 %486 }
 0x2c3   : > { %v493_v19 = vsel %vm490_vm1, %v481_v8, %v487_v7  ;;  %v496_v45 = vsel %vm490_vm1, %v487_v7, %v481_v8 }
 0x2c6   : > { %v550_v32 = vpop.permute.xlu0 %549 }
 0x2ca   : > { %v556_v14 = vpop.permute.xlu0 %555 }
 0x2cb   : > { %v560_v3 = vsel %vm557_vm2, %v550_v32, %v556_v14  ;;  %v563_v55 = vsel %vm557_vm2, %v556_v14, %v550_v32 }
 0x2cc   : > { %v587_v54 = vmul.f32 %v581_v28, %v563_v55  ;;  %v588_v41 = vmul.f32 %v581_v28, %v560_v3 }
 0x2ce   : > { %v619_v63 = vpop.permute.xlu0 %618 }
 0x2d2   : > { %v625_v36 = vpop.permute.xlu0 %624 }
 0x2d3   : > { %v629_v58 = vsel %vm626_vm4, %v619_v63, %v625_v36  ;;  %v632_v21 = vsel %vm626_vm4, %v625_v36, %v619_v63 }
 0x2e3   : > { %v769_v62 = vpop.permute.xlu0 %768 }
 0x2e4   : > { %v776_v63 = vmul.f32 %v769_v62, %v2067_v39 }
 0x2e7   : > { %v819_v59 = vpop.permute.xlu0 %818 }
 0x2eb   : > { %v688_v5 = vpop.permute.xlu0 %687 }
 0x2ef   : > { %v888_v15 = vpop.permute.xlu0 %887 }
 0x2f3   : > { %v957_v43 = vpop.permute.xlu0 %956 }
 0x2f7   : > { %v788_v53 = vpop.permute.xlu0 %787 }
 0x2fb   : > { %v794_v22 = vpop.permute.xlu0 %793 }
 0x329   : > { %v1167_v56 = vpop.f32.mrb[0].mxu1 }
 0x32a   : > { %v1177_v11 = vmul.f32 %v1175_v40, %v1167_v56  ;;  %v1169_v0 = vpop.f32.mrb[1].mxu1  ;;  %v519_v40 = vmul.f32 %v513_v60, %v496_v45  ;;  %v520_v56 = vmul.f32 %v513_v60, %v493_v19 }
 0x32b   : > { %v606_v0 = vmul.f32 %v1806_v26, %v587_v54 }
 0x32c   : > { %v1179_v61 = vadd.f32 %v1178_v44, %v1177_v11 }
 0x32e   : > { %v1180_v1 = vsel %vm383_vm0, %v1179_v61, -inf }
 0x32f   : > { %1181 = vmax.xlane.f32.xlu1 %v1180_v1 }
 0x340   : > { %649 = vperm.xlu1 %1471, %v1421_v48  }
 0x344   : > { %693 = vrot.lane.b32.xlu1 %v2067_v39, %s1494_s15 }
 0x348   : > { %1025 = vperm.xlu1 %1471, %v1444_v31  }
 0x34c   : > { %862 = vrot.lane.b32.xlu1 %v2067_v39, %s1495_s18 }
 0x350   : > { %931 = vrot.lane.b32.xlu1 %v2067_v39, %s1496_s19 }
 0x3bc   : > { %v1182_v30 = vpop.xlane.xlu1 %1181 }
 0x3bd   : > { %v1183_v52 = vsub.f32 %v1179_v61, %v1182_v30  ;;  %v607_v61 = vmul.f32 %v1809_v27, %v588_v41  ;;  %v537_v30 = vmul.f32 %v1796_v23, %v519_v40  ;;  %v801_v23 = vsel %vm795_vm6, %v794_v22, %v788_v53 }
 0x3bf   : > { %v1184_v4 = vmul.f32 1.442695, %v1183_v52  ;;  %v538_v52 = vmul.f32 %v1802_v25, %v520_v56  ;;  %v612_v28 = vadd.f32 %v606_v0, %v537_v30 }
 0x3c0   : > { %v650_v49 = vpop.permute.xlu1 %649 }
 0x3c1   : > { %1476 = vpow2.f32 %v1184_v4  ;;  %v656_v44 = vmul.f32 %v650_v49, %v632_v21  ;;  %v657_v11 = vmul.f32 %v650_v49, %v629_v58  ;;  %v857_v4 = vpop.permute.xlu0 %856  ;;  %v613_v60 = vadd.f32 %v607_v61, %v538_v52 }
 0x3c4   : > { %v694_v33 = vpop.permute.xlu1 %693 }
 0x3c5   : > { %v698_v20 = vsel %vm695_vm3, %v688_v5, %v694_v33  ;;  %v701_v51 = vsel %vm695_vm3, %v694_v33, %v688_v5  ;;  %v826_v33 = vmul.f32 %v819_v59, %v801_v23 }
 0x3c6   : > { %v725_v1 = vmul.f32 %v719_v35, %v701_v51  ;;  %v726_v48 = vmul.f32 %v719_v35, %v698_v20  ;;  %v798_v35 = vsel %vm795_vm6, %v788_v53, %v794_v22 }
 0x3c7   : > { %v825_v49 = vmul.f32 %v819_v59, %v798_v35 }
 0x3c8   : > { %v2136_v17 = vpop.permute.xlu1 %1025  ;;  %v744_v8 = vmul.f32 %v1827_v10, %v725_v1  ;;  %v745_v26 = vmul.f32 %v1830_v29, %v726_v48  ;;  %v775_v29 = vmul.f32 %v769_v62, %v2063_v9 }
 0x3c9   : > { %v844_v9 = vmul.f32 %v1885_v50, %v825_v49 }
 0x3cb   : > { %v2123_v38 = vpop.eup %1476 }
 0x3cc   : > { %v1186_v42 = vsel %vm383_vm0, %v2123_v38, 0.0  ;;  %v863_v31 = vpop.permute.xlu1 %862 }
 0x3cd   : > { %1187 = vadd.xlane.f32.xlu1 %v1186_v42  ;;  %v675_v42 = vmul.f32 %v1837_v13, %v656_v44  ;;  %v867_v25 = vsel %vm864_vm5, %v857_v4, %v863_v31  ;;  %v870_v13 = vsel %vm864_vm5, %v863_v31, %v857_v4 }
 0x3ce   : > { %v894_v53 = vmul.f32 %v888_v15, %v867_v25  ;;  %v895_v3 = vmul.f32 %v888_v15, %v870_v13 }
 0x3cf   : > { %v681_v7 = vadd.f32 %v675_v42, %v612_v28 }
 0x3d0   : > { %v932_v32 = vpop.permute.xlu1 %931  ;;  %v913_v62 = vmul.f32 %v1874_v34, %v894_v53  ;;  %v914_v22 = vmul.f32 %v1877_v57, %v895_v3 }
 0x3d1   : > { %v750_v14 = vadd.f32 %v744_v8, %v681_v7 }
 0x3d3   : > { %v781_v55 = vadd.f32 %v775_v29, %v750_v14 }
 0x3d5   : > { %v850_v21 = vadd.f32 %v844_v9, %v781_v55 }
 0x3d7   : > { %v919_v40 = vadd.f32 %v913_v62, %v850_v21 }
 0x3de   : > { %1000 = vrot.lane.b32.xlu1 %v2067_v39, %s1497_s20  ;;  %v845_v39 = vmul.f32 %v1888_v6, %v826_v33 }
 0x3e2   : > { %1269 = vperm.xlu1 %1471, %v1266_v24   ;;  %v676_v24 = vmul.f32 %v1840_v18, %v657_v11  ;;  %v926_v18 = vpop.permute.xlu0 %925 }
 0x3e3   : > { %v936_v36 = vsel %vm933_vm7, %v926_v18, %v932_v32  ;;  %v939_v5 = vsel %vm933_vm7, %v932_v32, %v926_v18 }
 0x3e4   : > { %v682_v27 = vadd.f32 %v676_v24, %v613_v60  ;;  %v963_v45 = vmul.f32 %v957_v43, %v936_v36  ;;  %v964_v54 = vmul.f32 %v957_v43, %v939_v5 }
 0x3e6   : > { %v751_v10 = vadd.f32 %v745_v26, %v682_v27  ;;  %v995_v58 = vpop.permute.xlu0 %994  ;;  %v982_v59 = vmul.f32 %v1943_v46, %v963_v45  ;;  %v983_v15 = vmul.f32 %v1967_v2, %v964_v54 }
 0x3e8   : > { %v782_v19 = vadd.f32 %v776_v63, %v751_v10  ;;  %v988_v56 = vadd.f32 %v982_v59, %v919_v40 }
 0x3ea   : > { %v851_v20 = vadd.f32 %v845_v39, %v782_v19  ;;  %v1075_v1 = vpop.permute.xlu0 %1074 }
 0x3ec   : > { %v920_v6 = vadd.f32 %v914_v22, %v851_v20 }
 0x3ee   : > { %v989_v44 = vadd.f32 %v983_v15, %v920_v6 }
 0x45a   : > { %v1188_v41 = vpop.xlane.xlu1 %1187 }
 0x45b   : > { %1478 = vrcp.f32 %v1188_v41 }
 0x45e   : > { %v1001_v51 = vpop.permute.xlu1 %1000 }
 0x45f   : > { %v1005_v43 = vsel %vm1002_vm8, %v995_v58, %v1001_v51  ;;  %v1008_v50 = vsel %vm1002_vm8, %v1001_v51, %v995_v58 }
 0x460   : > { %v1032_v34 = vmul.f32 %v2136_v17, %v1005_v43  ;;  %v1033_v57 = vmul.f32 %v2136_v17, %v1008_v50 }
 0x462   : > { %v1051_v11 = vmul.f32 %v1971_v47, %v1032_v34  ;;  %v1052_v46 = vmul.f32 %v1974_v37, %v1033_v57  ;;  %v1265_v47 = vld [vmem:[%s2209_s8] sm:$0xff]  ;;  %v1270_v37 = vpop.permute.xlu1 %1269 }
 0x464   : > { %v1057_v2 = vadd.f32 %v1051_v11, %v988_v56  ;;  %v1058_v0 = vadd.f32 %v1052_v46, %v989_v44 }
 0x465   : > { %v1479_v61 = vpop.eup %1478 }
 0x466   : > { %v1082_v48 = vadd.f32 %v1075_v1, %v1058_v0  ;;  %v1081_v16 = vadd.f32 %v1075_v1, %v1057_v2  ;;  %v1190_v31 = vmul.f32 %v1479_v61, %v2123_v38 }
 0x468   : > { %1194 = vmatprep.subr.mxu1 %v1082_v48 }
 0x469   : > { %1195 = vmatpush1.msra.mxu1 %v1081_v16 }
 0x46a   : > { %1446 = vmatmul.mubr.msk.f32.vlgmr.msra.gmra.mrb[2].mxu1 %vm383_vm0, %v1190_v31 }
 0x46b   : > { %1339 = vmatprep.mubr.f32.mxu1 %v2220_v12 }
 0x53d   : > { %v1260_v17 = vpop.f32.mrb[2].mxu1 }
 0x53e   : > { %v1262_v30 = vpop.f32.mrb[3].mxu1 }
 0x53f   : > { %1275 = vmatprep.subr.mxu1 %v1262_v30 }
 0x540   : > { %1276 = vmatpush1.msra.mxu1 %v1260_v17 }
 0x541   : > { %1447 = vmatmul.mubr.msk.f32.vlgmr.msra.gmra.mrb[4].mxu1 %vm383_vm0, %v1265_v47 }
 0x614   : > { %v1341_v38 = vpop.f32.mrb[4].mxu1 }
 0x615   : > { %v1342_v52 = vadd.f32 %v1341_v38, %v1270_v37  ;;  %v1343_v4 = vpop.f32.mrb[5].mxu1 }
 0x616   : > { %v1344_v12 = vadd.f32 %v1343_v4, %v1270_v37 }
 0x617   : > { %1346 = vst [vmem:[%s359_s28] sm:$0xff] %v1342_v52 }
 0x618   : > { %1347 = vst [vmem:[%s359_s28 + $0x8] sm:$0xff] %v1344_v12 }
 0x619 PF: > { %s20_s13 = sadd.s32 1, %s1486_s13  }
 0x61a   : > { %p17_p4 = scmp.ge.s32.totalorder %s20_s13, 4  }
 0x61c   :  { %19 = sbr.rel (!%p17_p4) target bundleno = 1 (0x1), region = 105 }

</bundles_post_ra>
